<compile_context>
chip_gen: v5e
topology: v5e:2x2
jax: 0.10.0
libtpu: 0.0.40
codegen_flags: <defaults>
</compile_context>

<pallas_src>
import functools
import math

import jax
import jax.numpy as jnp
from jax.experimental import pallas as pl
from jax.experimental.pallas import tpu as pltpu


def _round_up(a, b):
    return (a + b - 1) // b * b


def _vmem_capacity_bytes():
    """Physical VMEM per TensorCore; conservative 64 MiB (v7x) if unknown."""
    try:
        cap = getattr(pltpu.get_tpu_info(), "vmem_capacity_bytes", None)
        if cap:
            return int(cap)
    except Exception:
        pass
    return 64 * 1024 * 1024


def _split_lut_bf16(lut, n_terms):
    """Exact multi-term bf16 decomposition: sum(terms, f32) == lut (to ~1 ulp).

    bf16 tables need 1 term, f16 tables 2, f32 tables 3. The gather matmul's
    one-hot operand is exactly 0/1, so each dot reproduces the term exactly and
    the f32 sum reconstructs the original value.
    """
    if n_terms == 1:
        return lut.astype(jnp.bfloat16)[None]
    x = lut.astype(jnp.float32)
    terms = []
    for _ in range(n_terms):
        t = x.astype(jnp.bfloat16)
        terms.append(t)
        x = x - t.astype(jnp.float32)
    return jnp.stack(terms)


def _choose_tok_blk(n_tok, vocab_pad, g, tok_blk_max=512):
    """Pick the token block size (multiple of the sublane granularity g)."""
    # Cap block size when the padded vocab is large so the live one-hot tile
    # (tok_blk x vocab_pad) stays small and doesn't spill.
    cap = tok_blk_max if vocab_pad < 1024 else min(tok_blk_max, 256)
    cap = max(cap, g)
    ng = _round_up(max(n_tok, 1), g)
    if ng <= cap:
        # Small problems: split into >= 2 blocks so both v7x TensorCores work.
        if ng >= 2 * g:
            return _round_up((ng + 1) // 2, g)
        return ng
    # Large problems: pick from {512, 256, 128} minimizing padded rows,
    # preferring larger blocks on ties (amortizes ~0.35us per-step overhead).
    cands = [b for b in (512, 256, 128) if b <= cap and b % g == 0] or [cap]
    return min(cands, key=lambda b: (_round_up(n_tok, b) - n_tok, -b))


# ---------------------------------------------------------------------------
# Fast path: VMEM-resident (bf16-split) LUT, blocked tokens, one-hot on MXU.
# ---------------------------------------------------------------------------
def _embed_onehot_kernel(ids_ref, lut_ref, out_ref, *, scale, n_terms):
    # ids_ref: (tok_blk, 1) int32
    # lut_ref: (n_terms, vocab_pad, d_model_pad) bf16, VMEM-resident
    # out_ref: (tok_blk, d_model_pad)
    tok_blk = ids_ref.shape[0]
    vocab_pad = lut_ref.shape[1]

    ids = ids_ref[...]                                                 # (tok_blk, 1)
    vocab_iota = jax.lax.broadcasted_iota(jnp.int32, (tok_blk, vocab_pad), 1)
    # 0/1 one-hot in bf16 is exact; out-of-range ids yield an all-zero row.
    one_hot = jnp.where(ids == vocab_iota, 1.0, 0.0).astype(jnp.bfloat16)

    acc = jnp.dot(one_hot, lut_ref[0], preferred_element_type=jnp.float32)
    for t in range(1, n_terms):                      # static unroll (1-3 MXU passes)
        acc = acc + jnp.dot(one_hot, lut_ref[t], preferred_element_type=jnp.float32)

    # Scale in fp32, cast to the table's dtype (matches PyTorch semantics).
    out_ref[...] = (acc * scale).astype(out_ref.dtype)


def _embeddings_onehot(ids_flat, lut_cols, out_dtype, scale, n_terms,
                       tok_blk, n_tok_pad, vocab_pad, vmem_limit):
    n_tok = ids_flat.shape[0]
    vocab, d_model_pad = lut_cols.shape

    if n_tok_pad != n_tok:
        ids_flat = jnp.pad(ids_flat, (0, n_tok_pad - n_tok))          # pad with index 0
    ids_col = ids_flat.reshape(n_tok_pad, 1)

    lut_pad = lut_cols
    if vocab_pad != vocab:
        lut_pad = jnp.pad(lut_cols, ((0, vocab_pad - vocab), (0, 0)))
    lut_split = _split_lut_bf16(lut_pad, n_terms)   # (n_terms, vocab_pad, d_model_pad)

    grid = (n_tok_pad // tok_blk,)
    out_flat = pl.pallas_call(
        functools.partial(_embed_onehot_kernel, scale=scale, n_terms=n_terms),
        out_shape=jax.ShapeDtypeStruct((n_tok_pad, d_model_pad), out_dtype),
        grid_spec=pltpu.PrefetchScalarGridSpec(
            num_scalar_prefetch=0,
            grid=grid,
            in_specs=[
                # Token-id column for this block of tokens.
                pl.BlockSpec((tok_blk, 1), lambda i: (i, 0)),
                # Whole split LUT, resident: constant block index so it's DMA'd
                # once; single pipeline buffer halves its VMEM footprint.
                pl.BlockSpec((n_terms, vocab_pad, d_model_pad), lambda i: (0, 0, 0),
                             pipeline_mode=pl.Buffered(1)),
            ],
            out_specs=pl.BlockSpec((tok_blk, d_model_pad), lambda i: (i, 0)),
        ),
        compiler_params=pltpu.CompilerParams(
            dimension_semantics=("parallel",),        # disjoint output blocks
            vmem_limit_bytes=vmem_limit,              # generation-aware, with headroom
        ),
    )(ids_col, lut_split)
    return out_flat


# ---------------------------------------------------------------------------
# Fallback: manual double-buffered multi-row DMA gather (table stays in HBM).
# ---------------------------------------------------------------------------
def _embed_gather_kernel(ids_ref, lut_hbm, out_ref, buf, sem, *, scale, rows):
    # ids_ref: (n_tok_pad,) int32 in SMEM (scalar prefetch)
    # lut_hbm: (vocab, d_model_pad) in HBM (memory_space=pl.ANY)
    # out_ref: (rows, d_model_pad)
    # buf:     (2, rows, d_model_pad) VMEM scratch; sem: (2, rows) DMA semaphores
    step = pl.program_id(0)
    n_steps = pl.num_programs(0)
    slot = step % 2

    def issue(block, slot_):
        base = block * rows
        for r in range(rows):                                  # static unroll
            idx = ids_ref[base + r]
            pltpu.make_async_copy(
                lut_hbm.at[pl.ds(idx, 1)],
                buf.at[slot_, pl.ds(r, 1)],
                sem.at[slot_, r],
            ).start()

    @pl.when(step == 0)
    def _():
        issue(0, 0)                                            # prime the pipeline

    @pl.when(step + 1 < n_steps)
    def _():
        issue(step + 1, 1 - slot)                              # prefetch next block

    for r in range(rows):                                      # wait current block
        pltpu.make_async_copy(
            lut_hbm.at[pl.ds(0, 1)],
            buf.at[slot, pl.ds(r, 1)],
            sem.at[slot, r],
        ).wait()

    out_ref[...] = (buf[slot].astype(jnp.float32) * scale).astype(out_ref.dtype)


def _embeddings_row_gather(ids_flat, lut_cols, out_dtype, scale, rows):
    n_tok = ids_flat.shape[0]
    _, d_model_pad = lut_cols.shape
    n_tok_pad = _round_up(max(n_tok, 1), rows)
    if n_tok_pad != n_tok:
        ids_flat = jnp.pad(ids_flat, (0, n_tok_pad - n_tok))   # pad with index 0

    grid = (n_tok_pad // rows,)
    out_flat = pl.pallas_call(
        functools.partial(_embed_gather_kernel, scale=scale, rows=rows),
        out_shape=jax.ShapeDtypeStruct((n_tok_pad, d_model_pad), out_dtype),
        grid_spec=pltpu.PrefetchScalarGridSpec(
            num_scalar_prefetch=1,                     # ids -> SMEM
            grid=grid,
            in_specs=[pl.BlockSpec(memory_space=pl.ANY)],      # LUT stays in HBM
            out_specs=pl.BlockSpec((rows, d_model_pad), lambda i, ids: (i, 0)),
            scratch_shapes=[
                pltpu.VMEM((2, rows, d_model_pad), lut_cols.dtype),
                pltpu.SemaphoreType.DMA((2, rows)),
            ],
        ),
        compiler_params=pltpu.CompilerParams(
            # Manual double-buffering assumes sequential grid execution.
            dimension_semantics=("arbitrary",),
        ),
    )(ids_flat, lut_cols)
    return out_flat


# ---------------------------------------------------------------------------
# Public wrapper.
# ---------------------------------------------------------------------------
def embeddings_forward(x, lut, *, tok_blk_max=512, force_gather=False):
    """x: [B, S] integer indices; lut: [vocab, d_model]. Returns [B, S, d_model]."""
    B, S = x.shape
    vocab, d_model = lut.shape
    n_tok = B * S
    scale = float(math.sqrt(d_model))
    ids_flat = x.reshape(n_tok).astype(jnp.int32)

    out_itemsize = jnp.dtype(lut.dtype).itemsize
    g = 8 * max(1, 4 // out_itemsize)                  # sublane granularity per dtype
    d_model_pad = _round_up(d_model, 128)              # lane-dense output stores
    vocab_pad = _round_up(vocab, 128)                  # MXU / lane friendly one-hot

    # TODO(synk): pre-pad / pre-split the table once at module init instead of
    # per forward call (this pad/split is ~table-sized HBM traffic per call).
    lut_cols = lut
    if d_model_pad != d_model:
        lut_cols = jnp.pad(lut, ((0, 0), (0, d_model_pad - d_model)))

    dt = jnp.dtype(lut.dtype)
    if dt == jnp.bfloat16:
        n_terms = 1                                    # single-pass exact
    elif dt == jnp.float16:
        n_terms = 2
    elif dt == jnp.float32:
        n_terms = 3                                    # exact to ~1 f32 ulp
    else:
        n_terms = 0                                    # non-float table -> gather path

    tok_blk = _choose_tok_blk(n_tok, vocab_pad, g, tok_blk_max)
    n_tok_pad = _round_up(n_tok, tok_blk)

    # Generation-aware VMEM budget: ~80% of physical (v7x: ~51 MiB, v5e/v6e: ~102 MiB).
    vmem_cap = _vmem_capacity_bytes()
    vmem_limit = min(int(vmem_cap * 0.8), 110 * 1024 * 1024)

    vmem_est = (
        n_terms * vocab_pad * d_model_pad * 2          # resident bf16 LUT terms (single-buffered)
        + 2 * tok_blk * d_model_pad * out_itemsize     # output blocks (double-buffered)
        + 2 * tok_blk * 128 * 4                        # id blocks (lane-padded)
        + tok_blk * vocab_pad * (2 + 4)                # bf16 one-hot + int32 iota/compare
        + tok_blk * d_model_pad * 4                    # f32 accumulator
    )
    # TODO(synk): re-derive the one-hot vs. gather crossover per generation;
    # v5e's MXU (~197 TF/s) goes compute-bound at a much smaller vocab_pad.
    use_onehot = (
        (not force_gather)
        and n_terms > 0
        and vocab_pad <= 2048
        and vmem_est <= int(0.75 * vmem_limit)
    )

    if use_onehot:
        out_flat = _embeddings_onehot(ids_flat, lut_cols, lut.dtype, scale, n_terms,
                                      tok_blk, n_tok_pad, vocab_pad, vmem_limit)
    else:
        rows = max(g, 32 if n_tok >= 256 else 8)       # rows gathered per grid step
        out_flat = _embeddings_row_gather(ids_flat, lut_cols, lut.dtype, scale, rows)

    return out_flat[:n_tok, :d_model].reshape(B, S, d_model)


if __name__ == "__main__":
    # Small shapes consistent with the module: batch=2, seq=8, vocab=50, d_model=32
    B, S, vocab, d_model = 2, 8, 50, 32

    key = jax.random.PRNGKey(0)
    k_lut, k_idx = jax.random.split(key)

    # Deterministic parameter init (nn.Embedding weight ~ N(0, 1)).
    lut = jax.random.normal(k_lut, (vocab, d_model), dtype=jnp.float32)
    x = jax.random.randint(k_idx, (B, S), 0, vocab, dtype=jnp.int32)

    ref = lut[x] * math.sqrt(d_model)

    # Fast path (VMEM-resident split LUT + one-hot MXU gather).
    out = jax.block_until_ready(embeddings_forward(x, lut))
    assert out.shape == (B, S, d_model)
    assert out.dtype == lut.dtype
    assert jnp.allclose(out, ref, atol=1e-5, rtol=1e-5), float(
        jnp.max(jnp.abs(out - ref))
    )

    # Fallback path (manual double-buffered HBM row gather), forced for coverage.
    out_fb = jax.block_until_ready(embeddings_forward(x, lut, force_gather=True))
    assert jnp.allclose(out_fb, ref, atol=1e-5, rtol=1e-5), float(
        jnp.max(jnp.abs(out_fb - ref))
    )

    # bf16 table: single-pass MXU gather.
    lut_bf16 = lut.astype(jnp.bfloat16)
    out_bf = jax.block_until_ready(embeddings_forward(x, lut_bf16))
    ref_bf = (lut_bf16[x].astype(jnp.float32) * math.sqrt(d_model)).astype(jnp.bfloat16)
    assert out_bf.dtype == jnp.bfloat16
    assert jnp.allclose(out_bf.astype(jnp.float32), ref_bf.astype(jnp.float32),
                        atol=1e-2, rtol=1e-2)

    print("KERNEL_OK")
</pallas_src>

<mosaic_0001>
module attributes {stable_mosaic.version = 11 : i64} {
  func.func @_embed_onehot_kernel(%arg0: i32, %arg1: memref<8x1xi32, #tpu.memory_space<vmem>>, %arg2: memref<3x128x128xbf16, #tpu.memory_space<vmem>>, %arg3: memref<8x128xf32, #tpu.memory_space<vmem>>) attributes {dimension_semantics = [#tpu.dimension_semantics<parallel>], iteration_bounds = array<i64: 2>, scalar_prefetch = 0 : i64, scratch_operands = 0 : i64, tpu.core_type = #tpu.core_type<tc>, window_params = [{transform_indices = @transform_0, window_bounds = array<i64: 8, 1>}, {pipeline_mode = #tpu.pipeline_mode<synchronous>, transform_indices = @transform_1, window_bounds = array<i64: 3, 128, 128>}, {transform_indices = @transform_2, window_bounds = array<i64: 8, 128>}]} {
    %c0 = arith.constant 0 : index
    %c0_0 = arith.constant 0 : index
    %0 = vector.load %arg1[%c0, %c0_0] : memref<8x1xi32, #tpu.memory_space<vmem>>, vector<8x1xi32>
    %1 = tpu.iota {dimensions = array<i32: 1>} : vector<8x128xi32>
    %2 = vector.broadcast %0 : vector<8x1xi32> to vector<8x128xi32>
    %3 = arith.cmpi eq, %2, %1 : vector<8x128xi32>
    %cst = arith.constant 1.000000e+00 : f32
    %cst_1 = arith.constant 0.000000e+00 : f32
    %4 = vector.broadcast %cst : f32 to vector<8x128xf32>
    %5 = vector.broadcast %cst_1 : f32 to vector<8x128xf32>
    %6 = arith.select %3, %4, %5 : vector<8x128xi1>, vector<8x128xf32>
    %7 = arith.truncf %6 : vector<8x128xf32> to vector<8x128xbf16>
    %c0_2 = arith.constant 0 : index
    %c0_3 = arith.constant 0 : index
    %c0_4 = arith.constant 0 : index
    %8 = vector.load %arg2[%c0_2, %c0_3, %c0_4] : memref<3x128x128xbf16, #tpu.memory_space<vmem>>, vector<1x128x128xbf16>
    %9 = vector.shape_cast %8 : vector<1x128x128xbf16> to vector<128x128xbf16>
    %cst_5 = arith.constant dense<0.000000e+00> : vector<8x128xf32>
    %10 = tpu.matmul %7, %9, %cst_5 {dimension_numbers = #tpu.dot_dimension_numbers<[1], [0], [0], [1], [0, 0, 1, 1], [], []>} : vector<8x128xbf16>, vector<128x128xbf16>, vector<8x128xf32> -> vector<8x128xf32>
    %c1 = arith.constant 1 : index
    %c0_6 = arith.constant 0 : index
    %c0_7 = arith.constant 0 : index
    %11 = vector.load %arg2[%c1, %c0_6, %c0_7] : memref<3x128x128xbf16, #tpu.memory_space<vmem>>, vector<1x128x128xbf16>
    %12 = vector.shape_cast %11 : vector<1x128x128xbf16> to vector<128x128xbf16>
    %cst_8 = arith.constant dense<0.000000e+00> : vector<8x128xf32>
    %13 = tpu.matmul %7, %12, %cst_8 {dimension_numbers = #tpu.dot_dimension_numbers<[1], [0], [0], [1], [0, 0, 1, 1], [], []>} : vector<8x128xbf16>, vector<128x128xbf16>, vector<8x128xf32> -> vector<8x128xf32>
    %14 = arith.addf %10, %13 : vector<8x128xf32>
    %c2 = arith.constant 2 : index
    %c0_9 = arith.constant 0 : index
    %c0_10 = arith.constant 0 : index
    %15 = vector.load %arg2[%c2, %c0_9, %c0_10] : memref<3x128x128xbf16, #tpu.memory_space<vmem>>, vector<1x128x128xbf16>
    %16 = vector.shape_cast %15 : vector<1x128x128xbf16> to vector<128x128xbf16>
    %cst_11 = arith.constant dense<0.000000e+00> : vector<8x128xf32>
    %17 = tpu.matmul %7, %16, %cst_11 {dimension_numbers = #tpu.dot_dimension_numbers<[1], [0], [0], [1], [0, 0, 1, 1], [], []>} : vector<8x128xbf16>, vector<128x128xbf16>, vector<8x128xf32> -> vector<8x128xf32>
    %18 = arith.addf %14, %17 : vector<8x128xf32>
    %cst_12 = arith.constant 5.65685415 : f32
    %19 = vector.broadcast %cst_12 : f32 to vector<8x128xf32>
    %20 = arith.mulf %18, %19 : vector<8x128xf32>
    %c0_13 = arith.constant 0 : index
    %c0_14 = arith.constant 0 : index
    %21 = vector.load %arg3[%c0_13, %c0_14] : memref<8x128xf32, #tpu.memory_space<vmem>>, vector<8x128xf32>
    tpu.vector_store %arg3[%c0_13, %c0_14], %20 {strides = array<i32>} : memref<8x128xf32, #tpu.memory_space<vmem>>, vector<8x128xf32>,
    return
  }
  func.func @transform_0(%arg0: i32) -> (i32, i32) {
    %c0_i32 = arith.constant 0 : i32
    %c0_i32_0 = arith.constant 0 : i32
    return %arg0, %c0_i32 : i32, i32
  }
  func.func @transform_1(%arg0: i32) -> (i32, i32, i32) {
    %c0_i32 = arith.constant 0 : i32
    %c0_i32_0 = arith.constant 0 : i32
    %c0_i32_1 = arith.constant 0 : i32
    %c0_i32_2 = arith.constant 0 : i32
    return %c0_i32, %c0_i32_0, %c0_i32_1 : i32, i32, i32
  }
  func.func @transform_2(%arg0: i32) -> (i32, i32) {
    %c0_i32 = arith.constant 0 : i32
    %c0_i32_0 = arith.constant 0 : i32
    return %arg0, %c0_i32 : i32, i32
  }
}

</mosaic_0001>

<bundles_post_ra>
// kernel: tpu_custom_call.1
= control target key start
LH: loop header
LB: loop body
LE: loop exit
PB: predicated region body
PF: predicated region fallthrough
CT: control target
= control target key end

     0   :  { %7 = vsyncpa [#allocation3], 0  ;;  %s894_s0 = inlined_call_operand.vmem [shape: s32[16,1], index: 0, kind: input, shape index: {}]   ;;  %s895_s1 = inlined_call_operand.hbm [shape: bf16[3,128,128], index: 1, kind: input, shape index: {}]   ;;  %s896_s2 = inlined_call_operand.hbm [shape: f32[16,128], index: 2, kind: output, shape index: {}]  }
   0x1   :  { %8 = vsyncpa [#allocation4], 0 }
   0x2   :  { %10 = vsyncpa [#allocation4 + $0x1], 0  ;;  %s799_s9 = smov 0   ;;  %s801_s10 = smov 0  }
   0x3   :  { %s803_s11 = smov 0   ;;  %s805_s12 = smov 0  }
   0x4 LB: > { %s820_s13 = sadd.s32 4294967295, %s777_s12   ;;  %s488_s14 = sadd.s32 4294967294, %s777_s12   ;;  %s777_s12 = sphi %s805_s12, %s902_s12   ;;  %s773_s11 = sphi %s803_s11, %s901_s11   ;;  %s769_s10 = sphi %s801_s10, %s900_s10   ;;  %s765_s9 = sphi %s799_s9, %s899_s9  }
   0x5   : > { %s824_s15 = sadd.s32 1, %s777_s12   ;;  %s70_s16 = sadd.s32 1, %s773_s11 }
   0x6   : > { %s67_s17 = ssub.s32 %s777_s12, %s824_s15  ;;  %p80_p0 = scmp.ne.s32.totalorder %s773_s11, %s769_s10 }
   0x7   : > { %p68_p1 = scmp.eq.s32.totalorder %s67_s17, 0  ;;  %p81_p2 = scmp.eq.s32.totalorder %s820_s13, 1 }
   0x8   : > { %p86_p3 = scmp.ne.s32.totalorder %s769_s10, %s765_s9  ;;  %p87_p4 = scmp.eq.s32.totalorder %s488_s14, 1 }
   0x9   : > { %s835_s18 = scalar_select %p68_p1, %s773_s11, %s70_s16  }
   0xa   : > { %p837_p5 = por %p81_p2, %p80_p0  ;;  %p841_p6 = por %p87_p4, %p86_p3 }
   0xb   : > { %p489_p7 = scmp.ge.s32.totalorder %s777_s12, 1  ;;  %p94_p8 = scmp.lt.s32.totalorder %s777_s12, 3 }
   0xc   : > { %p640_p9 = scmp.eq.s32.totalorder %s820_s13, 0  ;;  %s105_s23 = sshll.u32 %s895_s1, 4  ;;  %s106_s23 = int_to_ptr.hbm [resolvable:$true] %s105_s23 }
   0xd   : > { %p95_p10 = pnand %p489_p7, %p94_p8  ;;  %s779_s24 = smov [#allocation2]  }
   0xe   : > { %s107_s25 = sshll.u32 %s779_s24, 4  ;;  %s780_s26 = smov 64   ;;  %s108_s25 = int_to_ptr.vmem [resolvable:$true] %s107_s25 }
   0xf   : > { %p632_p11 = pneg %p95_p10  ;;  %s781_s27 = smov 4  }
  0x10   : > { %130 = sbr.rel (%p95_p10) target bundleno = 287 (0x11f), region = 28 }
  0x11   : > { %p633_p12 = pnand %p640_p9, %p632_p11 }
  0x13   : > { %635 = dma.hbm_to_vmem [thread:$0]  (!%p633_p12), %s106_s23, 3072, %s108_s25, [#allocation3], %s780_s26, %s780_s26, %s781_s27  }
  0x15   : > { %756 = dma.done.wait (%p640_p9), [#allocation3], 3072  }
  0x16   : > { %758 = vsyncadd (%p640_p9), [#allocation3], 4294964224  ;;  %p152_p13 = scmp.lt.s32.totalorder %s820_s13, 1  ;;  %v782_v0 = vmov 0   ;;  %v617_v2 = vld [vmem:[#allocation2 + $0x78] sm:$0xff]  ;;  %v616_v5 = vld [vmem:[#allocation2 + $0x70] sm:$0xff]  ;;  %v157_v26 = vlaneseq }
  0x17   : > { %680 = vset.pattern.permute.xlu0 %v782_v0  ;;  %v609_v3 = vld [vmem:[#allocation2 + $0x38] sm:$0xff]  ;;  %246 = vmatpush.bf16.msra.mxu0 %v617_v2  ;;  %v608_v6 = vld [vmem:[#allocation2 + $0x30] sm:$0xff]  ;;  %v615_v8 = vld [vmem:[#allocation2 + $0x68] sm:$0xff]  ;;  %v783_v29 = vmov 1.0|1.0   ;;  %s149_s5 = sand.u32 1, %s769_s10  }
  0x18   : > { %s153_s28 = scalar_select %p152_p13, %s820_s13, 1  ;;  %v625_v4 = vld [vmem:[#allocation2 + $0xb8] sm:$0xff]  ;;  %307 = vmatpush.bf16.msra.mxu1 %v609_v3  ;;  %v624_v7 = vld [vmem:[#allocation2 + $0xb0] sm:$0xff]  ;;  %v607_v9 = vld [vmem:[#allocation2 + $0x28] sm:$0xff]  ;;  %v158_v27 = vand.u32 127, %v157_v26 }
  0x19   : > { %385 = vmatpush.bf16.msra.mxu2 %v625_v4  ;;  %v623_v10 = vld [vmem:[#allocation2 + $0xa8] sm:$0xff]  ;;  %v614_v11 = vld [vmem:[#allocation2 + $0x60] sm:$0xff]  ;;  %v613_v14 = vld [vmem:[#allocation2 + $0x58] sm:$0xff]  ;;  %s494_s6 = sshll.u32 %s149_s5, 3  ;;  %s599_s7 = sshll.u32 %s820_s13, 3 }
  0x1a   : > { %s495_s29 = sshll.u32 %s153_s28, 3  ;;  %v606_v12 = vld [vmem:[#allocation2 + $0x20] sm:$0xff]  ;;  %v605_v15 = vld [vmem:[#allocation2 + $0x18] sm:$0xff]  ;;  %v612_v17 = vld [vmem:[#allocation2 + $0x50] sm:$0xff]  ;;  %s412_s16 = scalar_lea.hbm %s896_s2, %s599_s7 }
  0x1b   : > { %s155_s4 = scalar_lea.vmem %s894_s0, %s495_s29  ;;  %247 = vmatpush.bf16.msra.mxu0 %v616_v5  ;;  %v622_v13 = vld [vmem:[#allocation2 + $0xa0] sm:$0xff]  ;;  %v621_v16 = vld [vmem:[#allocation2 + $0x98] sm:$0xff]  ;;  %v604_v18 = vld [vmem:[#allocation2 + $0x10] sm:$0xff]  ;;  %s151_s17 = scalar_lea.vmem [#allocation5], %s494_s6 }
  0x1c   : > { %v156_v1 = vld [vmem:[%s155_s4] sm:$0xff]  ;;  %308 = vmatpush.bf16.msra.mxu1 %v608_v6  ;;  %v620_v19 = vld [vmem:[#allocation2 + $0x90] sm:$0xff]  ;;  %v611_v20 = vld [vmem:[#allocation2 + $0x48] sm:$0xff]  ;;  %s414_s21 = sshll.u32 %s151_s17, 4  ;;  %s416_s22 = sshll.u32 %s412_s16, 4  ;;  %s415_s21 = int_to_ptr.vmem [resolvable:$true] %s414_s21  ;;  %s417_s22 = int_to_ptr.hbm [resolvable:$true] %s416_s22 }
  0x1d   : > { %160 = vperm.xlu0 %680, %v156_v1   ;;  %386 = vmatpush.bf16.msra.mxu2 %v624_v7  ;;  %v603_v21 = vld [vmem:[#allocation2 + $0x8] sm:$0xff]  ;;  %v610_v23 = vld [vmem:[#allocation2 + $0x40] sm:$0xff]  ;;  %s402_s23 = scalar_lea.sflag [#allocation4], %s149_s5  ;;  %s725_s24 = sshra.s32 %s417_s22, 4  ;;  %s726_s24 = int_to_ptr.hbm [resolvable:$true] %s725_s24 }
  0x1e   : > { %v619_v22 = vld [vmem:[#allocation2 + $0x88] sm:$0xff]  ;;  %v602_v24 = vld [vmem:[#allocation2] sm:$0xff]  ;;  %s727_s13 = scalar_lea.hbm %s726_s24, 8  ;;  %s731_s27 = scalar_lea.hbm %s896_s2, 16 }
  0x1f   : > { %248 = vmatpush.bf16.msra.mxu0 %v615_v8  ;;  %v618_v25 = vld [vmem:[#allocation2 + $0x80] sm:$0xff]  ;;  %p728_p0 = scmp.ne.s32.totalorder %s726_s24, %s727_s13  ;;  %p732_p3 = scmp.lt.s32.totalorder %s726_s24, %s896_s2 }
  0x20   : > { %309 = vmatpush.bf16.msra.mxu1 %v607_v9  ;;  %p733_p4 = scmp.lt.s32.totalorder %s731_s27, %s727_s13 }
  0x21   : > { %387 = vmatpush.bf16.msra.mxu2 %v623_v10  ;;  %p729_p1 = pnand %p728_p0, %p837_p5 }
  0x22   : > { %p734_p7 = por %p733_p4, %p732_p3 }
  0x23   : > { %249 = vmatpush.bf16.msra.mxu0 %v614_v11  ;;  %p730_p2 = pneg %p729_p1 }
  0x24   : > { %310 = vmatpush.bf16.msra.mxu1 %v606_v12 }
  0x25   : > { %388 = vmatpush.bf16.msra.mxu2 %v622_v13  ;;  %p735_p8 = pnand %p734_p7, %p730_p2 }
  0x27   : > { %250 = vmatpush.bf16.msra.mxu0 %v613_v14 }
  0x28   : > { %311 = vmatpush.bf16.msra.mxu1 %v605_v15 }
  0x29   : > { %389 = vmatpush.bf16.msra.mxu2 %v621_v16 }
  0x2b   : > { %251 = vmatpush.bf16.msra.mxu0 %v612_v17 }
  0x2c   : > { %312 = vmatpush.bf16.msra.mxu1 %v604_v18 }
  0x2d   : > { %390 = vmatpush.bf16.msra.mxu2 %v620_v19 }
  0x2f   : > { %252 = vmatpush.bf16.msra.mxu0 %v611_v20 }
  0x30   : > { %313 = vmatpush.bf16.msra.mxu1 %v603_v21 }
  0x31   : > { %391 = vmatpush.bf16.msra.mxu2 %v619_v22 }
  0x33   : > { %253 = vmatpush.bf16.msra.mxu0 %v610_v23 }
  0x34   : > { %314 = vmatpush.bf16.msra.mxu1 %v602_v24 }
  0x35   : > { %392 = vmatpush.bf16.msra.mxu2 %v618_v25 }
  0x8f   : > { %v161_v28 = vpop.permute.xlu0 %160 }
  0x90   : > { %vm162_vm0 = vcmp.eq.s32.totalorder %v161_v28, %v158_v27 }
  0x91   : > { %vm528_vm1 = vmpackc.low %vm162_vm0, %vm162_vm0 }
  0x92   : > { %529 = vmatmul.msk.bf16.vlgmr.msra.gmra.mxu0 %vm528_vm1, %v783_v29  ;;  %563 = vmatmul.msk.bf16.vlgmr.msra.gmra.mxu1 %vm528_vm1, %v783_v29 }
  0x93   : > { %597 = vmatmul.msk.bf16.vlgmr.msra.gmra.mxu2 %vm528_vm1, %v783_v29 }
 0x10f   : > { %v255_v30 = vpop.f32.mrf.mxu0  ;;  %v316_v31 = vpop.f32.mrf.mxu1 }
 0x110   : > { %v317_v32 = vadd.f32 %v316_v31, %v255_v30 }
 0x116   : > { %v394_v33 = vpop.f32.mrf.mxu2 }
 0x117   : > { %v398_v34 = vadd.f32 %v394_v33, %v317_v32  ;;  %v257_v35 = vpop.f32.mrf.mxu0  ;;  %v318_v36 = vpop.f32.mrf.mxu1 }
 0x119   : > { %v399_v37 = vmul.f32 5.656854, %v398_v34 }
 0x11b   : > { %400 = vst [vmem:[%s151_s17] sm:$0xff] %v399_v37 }
 0x11c   : > { %738 = shalt.err (!%p735_p8)
}
 0x11d   : > { %630 = dma.vmem_to_hbm [thread:$0]  (%p837_p5), %s415_s21, 128, %s417_s22, %s402_s23  }
 0x11e   : > { %v396_v38 = vpop.f32.mrf.mxu2 }
 0x11f PF: > { %p642_p9 = scmp.ge.s32.totalorder %s777_s12, 2  ;;  %s428_s30 = sand.u32 1, %s765_s9  }
 0x120   : > { %s429_s3 = scalar_lea.sflag [#allocation4], %s428_s30 }
 0x121   : > { %p637_p10 = pnand %p642_p9, %p841_p6 }
 0x123   : > { %p638_p11 = pneg %p637_p10 }
 0x125   : > { %760 = dma.done.wait (%p638_p11), %s429_s3, 128  }
 0x126   : > { %762 = vsyncadd (%p638_p11), %s429_s3, 4294967168  ;;  %p13_p12 = scmp.ge.s32.totalorder %s824_s15, 4   ;;  %s899_s9 = smov %s769_s10 }
 0x127   : > { %s900_s10 = smov %s773_s11  ;;  %s901_s11 = smov %s835_s18 }
 0x128   : > { %s902_s12 = smov %s824_s15  ;;  %15 = sbr.rel (!%p13_p12) target bundleno = 4 (0x4), region = 70 }
 0x12d   :  { %435 = vsyncpa [#allocation3], 1 }
 0x12e   :  { %437 = vsyncpa [#allocation3 + $0x1], 1 }
 0x12f   :  { %438 = vsyncpa [#allocation4], 1 }
 0x130   :  { %440 = vsyncpa [#allocation4 + $0x1], 1 }

</bundles_post_ra>
